<compile_context>
chip_gen: v7x
topology: tpu7x:2x2x1
jax: 0.10.0
libtpu: 0.0.40
codegen_flags: <defaults>
</compile_context>

<pallas_src>
import functools
import math

import jax
import jax.numpy as jnp
from jax.experimental import pallas as pl
from jax.experimental.pallas import tpu as pltpu


def _sumtanh_kernel(x_ref, wt_ref, o_ref, acc_ref, *, tk, compute_dtype):
    """One grid step: acc[TB, TO] += sum_t tanh(X[:, t] + W^T[t, :]) over this IN chunk."""
    k = pl.program_id(2)

    @pl.when(k == 0)
    def _init():
        acc_ref[...] = jnp.zeros_like(acc_ref)

    # Load the X tile once; columns below are extracted with *static* slices.
    x = x_ref[...].astype(compute_dtype)              # (TB, TK)

    acc = acc_ref[...]                                # (TB, TO), f32
    # Static unroll over the IN chunk.  Per step: (TB, 1) + (1, TO) broadcast-add
    # (VPU), tanh (EUP), f32 accumulate (VPU).  No 3-D intermediate, no XLU reduce.
    for t in range(tk):
        col = x[:, t:t + 1]                                        # (TB, 1)
        row = wt_ref[t:t + 1, :].astype(compute_dtype)             # (1, TO)
        acc = acc + jnp.tanh(col + row).astype(jnp.float32)
    acc_ref[...] = acc

    @pl.when(k == pl.num_programs(2) - 1)
    def _finalize():
        o_ref[...] = acc_ref[...].astype(o_ref.dtype)


def _pick_tile(dim, preferred, align):
    """Largest tile <= `preferred` that divides `dim` and is a multiple of `align`;
    falls back to the full dim (always a legal block size)."""
    if dim <= preferred:
        return dim
    t = preferred - preferred % align
    while t >= align:
        if dim % t == 0:
            return t
        t -= align
    return dim


def _default_compute_dtype(x_dtype):
    # bf16 VPU/EUP paths exist on v6e / v7x; v5e and older lack them -> stay f32.
    if x_dtype != jnp.float32:
        return x_dtype
    try:
        kind = jax.devices()[0].device_kind.lower()
    except Exception:  # pragma: no cover - be conservative if we cannot query
        return jnp.float32
    for old in ("v2", "v3", "v4", "v5"):
        if old in kind:
            return jnp.float32
    return jnp.bfloat16


def sum_tanh(x, w, *, batch_tile=None, out_tile=None, in_tile=None,
             compute_dtype=None):
    """out[b, o] = sum_i tanh(x[b, i] + w[o, i]);  x: (B, IN), w: (OUT, IN)."""
    B, IN = x.shape
    OUT, IN_w = w.shape
    assert IN == IN_w, "in_features mismatch"

    tb = batch_tile or _pick_tile(B, 128, 8)      # sublane axis of X / out
    to = out_tile or _pick_tile(OUT, 128, 128)    # lane axis of out (lane-dense)
    tk = in_tile or _pick_tile(IN, 128, 128)      # reduction chunk
    assert B % tb == 0 and OUT % to == 0 and IN % tk == 0

    cdt = (jnp.dtype(compute_dtype) if compute_dtype is not None
           else _default_compute_dtype(x.dtype))

    # Pre-transpose W so OUT is on the lane axis inside the kernel.
    wt = w.T                                       # (IN, OUT)

    grid = (B // tb, OUT // to, IN // tk)
    kernel = functools.partial(_sumtanh_kernel, tk=tk, compute_dtype=cdt)

    return pl.pallas_call(
        kernel,
        out_shape=jax.ShapeDtypeStruct((B, OUT), x.dtype),
        grid_spec=pltpu.PrefetchScalarGridSpec(
            num_scalar_prefetch=0,
            grid=grid,
            in_specs=[
                pl.BlockSpec((tb, tk), lambda i, j, k: (i, k)),   # X tile
                pl.BlockSpec((tk, to), lambda i, j, k: (k, j)),   # W^T tile
            ],
            out_specs=pl.BlockSpec((tb, to), lambda i, j, k: (i, j)),
            scratch_shapes=[pltpu.VMEM((tb, to), jnp.float32)],   # resident accumulator
        ),
        compiler_params=pltpu.CompilerParams(
            # batch / out parallel (megacore on v7x), reduction axis arbitrary & last
            dimension_semantics=("parallel", "parallel", "arbitrary"),
            # tiles above use ~1-2 MiB; stay well inside v7x's 64 MiB physical VMEM
            vmem_limit_bytes=32 * 1024 * 1024,
        ),
    )(x, wt)


def xavier_uniform(key, out_features, in_features, dtype=jnp.float32):
    # Matches torch.nn.init.xavier_uniform_: U(-a, a), a = sqrt(6 / (fan_in + fan_out))
    bound = math.sqrt(6.0 / (in_features + out_features))
    return jax.random.uniform(
        key, (out_features, in_features), dtype=dtype, minval=-bound, maxval=bound
    )


if __name__ == "__main__":
    B = 8
    in_features = 32
    out_features = 16

    key = jax.random.PRNGKey(0)
    kx, kw = jax.random.split(key)

    x = jax.random.normal(kx, (B, in_features), dtype=jnp.float32)
    W = xavier_uniform(kw, out_features, in_features)

    # Reference (plain JAX, same math as the PyTorch forward).
    ref = jnp.sum(jnp.tanh(W[None, :, :] + x[:, None, :]), axis=-1)

    # 1) Tight correctness check with f32 compute.
    out_f32 = jax.block_until_ready(sum_tanh(x, W, compute_dtype=jnp.float32))
    assert out_f32.shape == (B, out_features)
    assert jnp.allclose(out_f32, ref, atol=1e-5, rtol=1e-5)

    # 2) Default path (bf16 compute on v6e/v7x, f32 elsewhere) -- loose sanity check.
    out_auto = jax.block_until_ready(sum_tanh(x, W))
    assert out_auto.shape == (B, out_features)
    assert bool(jnp.all(jnp.isfinite(out_auto)))
    assert jnp.allclose(out_auto.astype(jnp.float32), ref, atol=0.5, rtol=0.05)

    print("KERNEL_OK")
</pallas_src>

<mosaic_0001>
module attributes {stable_mosaic.version = 11 : i64} {
  func.func @_sumtanh_kernel(%arg0: i32, %arg1: i32, %arg2: i32, %arg3: memref<8x32xf32, #tpu.memory_space<vmem>>, %arg4: memref<32x16xf32, #tpu.memory_space<vmem>>, %arg5: memref<8x16xf32, #tpu.memory_space<vmem>>, %arg6: memref<8x16xf32, #tpu.memory_space<vmem>>) attributes {dimension_semantics = [#tpu.dimension_semantics<parallel>, #tpu.dimension_semantics<parallel>, #tpu.dimension_semantics<arbitrary>], iteration_bounds = array<i64: 1, 1, 1>, scalar_prefetch = 0 : i64, scratch_operands = 1 : i64, tpu.core_type = #tpu.core_type<tc>, window_params = [{transform_indices = @transform_0, window_bounds = array<i64: 8, 32>}, {transform_indices = @transform_1, window_bounds = array<i64: 32, 16>}, {transform_indices = @transform_2, window_bounds = array<i64: 8, 16>}]} {
    %c0_i32 = arith.constant 0 : i32
    %0 = arith.cmpi eq, %arg2, %c0_i32 : i32
    %1 = arith.extui %0 : i1 to i32
    %c0_i32_0 = arith.constant 0 : i32
    %2 = arith.cmpi ne, %1, %c0_i32_0 : i32
    scf.if %2 {
      %cst = arith.constant 0.000000e+00 : f32
      %233 = vector.broadcast %cst : f32 to vector<8x16xf32>
      %c0_41 = arith.constant 0 : index
      %c0_42 = arith.constant 0 : index
      %234 = vector.load %arg6[%c0_41, %c0_42] : memref<8x16xf32, #tpu.memory_space<vmem>>, vector<8x16xf32>
      tpu.vector_store %arg6[%c0_41, %c0_42], %233 {strides = array<i32>} : memref<8x16xf32, #tpu.memory_space<vmem>>, vector<8x16xf32>,
    } else {
    }
    %c0 = arith.constant 0 : index
    %c0_1 = arith.constant 0 : index
    %3 = vector.load %arg3[%c0, %c0_1] : memref<8x32xf32, #tpu.memory_space<vmem>>, vector<8x32xf32>
    %c0_2 = arith.constant 0 : index
    %c0_3 = arith.constant 0 : index
    %4 = vector.load %arg6[%c0_2, %c0_3] : memref<8x16xf32, #tpu.memory_space<vmem>>, vector<8x16xf32>
    %5 = vector.extract_strided_slice %3 {offsets = [0, 0], sizes = [8, 1], strides = [1, 1]} : vector<8x32xf32> to vector<8x1xf32>
    %c0_4 = arith.constant 0 : index
    %c0_5 = arith.constant 0 : index
    %6 = vector.load %arg4[%c0_4, %c0_5] : memref<32x16xf32, #tpu.memory_space<vmem>>, vector<1x16xf32>
    %7 = vector.broadcast %5 : vector<8x1xf32> to vector<8x16xf32>
    %8 = vector.broadcast %6 : vector<1x16xf32> to vector<8x16xf32>
    %9 = arith.addf %7, %8 : vector<8x16xf32>
    %10 = math.tanh %9 : vector<8x16xf32>
    %11 = arith.addf %4, %10 : vector<8x16xf32>
    %12 = vector.extract_strided_slice %3 {offsets = [0, 1], sizes = [8, 1], strides = [1, 1]} : vector<8x32xf32> to vector<8x1xf32>
    %c1 = arith.constant 1 : index
    %c0_6 = arith.constant 0 : index
    %13 = vector.load %arg4[%c1, %c0_6] : memref<32x16xf32, #tpu.memory_space<vmem>>, vector<1x16xf32>
    %14 = vector.broadcast %12 : vector<8x1xf32> to vector<8x16xf32>
    %15 = vector.broadcast %13 : vector<1x16xf32> to vector<8x16xf32>
    %16 = arith.addf %14, %15 : vector<8x16xf32>
    %17 = math.tanh %16 : vector<8x16xf32>
    %18 = arith.addf %11, %17 : vector<8x16xf32>
    %19 = vector.extract_strided_slice %3 {offsets = [0, 2], sizes = [8, 1], strides = [1, 1]} : vector<8x32xf32> to vector<8x1xf32>
    %c2 = arith.constant 2 : index
    %c0_7 = arith.constant 0 : index
    %20 = vector.load %arg4[%c2, %c0_7] : memref<32x16xf32, #tpu.memory_space<vmem>>, vector<1x16xf32>
    %21 = vector.broadcast %19 : vector<8x1xf32> to vector<8x16xf32>
    %22 = vector.broadcast %20 : vector<1x16xf32> to vector<8x16xf32>
    %23 = arith.addf %21, %22 : vector<8x16xf32>
    %24 = math.tanh %23 : vector<8x16xf32>
    %25 = arith.addf %18, %24 : vector<8x16xf32>
    %26 = vector.extract_strided_slice %3 {offsets = [0, 3], sizes = [8, 1], strides = [1, 1]} : vector<8x32xf32> to vector<8x1xf32>
    %c3 = arith.constant 3 : index
    %c0_8 = arith.constant 0 : index
    %27 = vector.load %arg4[%c3, %c0_8] : memref<32x16xf32, #tpu.memory_space<vmem>>, vector<1x16xf32>
    %28 = vector.broadcast %26 : vector<8x1xf32> to vector<8x16xf32>
    %29 = vector.broadcast %27 : vector<1x16xf32> to vector<8x16xf32>
    %30 = arith.addf %28, %29 : vector<8x16xf32>
    %31 = math.tanh %30 : vector<8x16xf32>
    %32 = arith.addf %25, %31 : vector<8x16xf32>
    %33 = vector.extract_strided_slice %3 {offsets = [0, 4], sizes = [8, 1], strides = [1, 1]} : vector<8x32xf32> to vector<8x1xf32>
    %c4 = arith.constant 4 : index
    %c0_9 = arith.constant 0 : index
    %34 = vector.load %arg4[%c4, %c0_9] : memref<32x16xf32, #tpu.memory_space<vmem>>, vector<1x16xf32>
    %35 = vector.broadcast %33 : vector<8x1xf32> to vector<8x16xf32>
    %36 = vector.broadcast %34 : vector<1x16xf32> to vector<8x16xf32>
    %37 = arith.addf %35, %36 : vector<8x16xf32>
    %38 = math.tanh %37 : vector<8x16xf32>
    %39 = arith.addf %32, %38 : vector<8x16xf32>
    %40 = vector.extract_strided_slice %3 {offsets = [0, 5], sizes = [8, 1], strides = [1, 1]} : vector<8x32xf32> to vector<8x1xf32>
    %c5 = arith.constant 5 : index
    %c0_10 = arith.constant 0 : index
    %41 = vector.load %arg4[%c5, %c0_10] : memref<32x16xf32, #tpu.memory_space<vmem>>, vector<1x16xf32>
    %42 = vector.broadcast %40 : vector<8x1xf32> to vector<8x16xf32>
    %43 = vector.broadcast %41 : vector<1x16xf32> to vector<8x16xf32>
    %44 = arith.addf %42, %43 : vector<8x16xf32>
    %45 = math.tanh %44 : vector<8x16xf32>
    %46 = arith.addf %39, %45 : vector<8x16xf32>
    %47 = vector.extract_strided_slice %3 {offsets = [0, 6], sizes = [8, 1], strides = [1, 1]} : vector<8x32xf32> to vector<8x1xf32>
    %c6 = arith.constant 6 : index
    %c0_11 = arith.constant 0 : index
    %48 = vector.load %arg4[%c6, %c0_11] : memref<32x16xf32, #tpu.memory_space<vmem>>, vector<1x16xf32>
    %49 = vector.broadcast %47 : vector<8x1xf32> to vector<8x16xf32>
    %50 = vector.broadcast %48 : vector<1x16xf32> to vector<8x16xf32>
    %51 = arith.addf %49, %50 : vector<8x16xf32>
    %52 = math.tanh %51 : vector<8x16xf32>
    %53 = arith.addf %46, %52 : vector<8x16xf32>
    %54 = vector.extract_strided_slice %3 {offsets = [0, 7], sizes = [8, 1], strides = [1, 1]} : vector<8x32xf32> to vector<8x1xf32>
    %c7 = arith.constant 7 : index
    %c0_12 = arith.constant 0 : index
    %55 = vector.load %arg4[%c7, %c0_12] : memref<32x16xf32, #tpu.memory_space<vmem>>, vector<1x16xf32>
    %56 = vector.broadcast %54 : vector<8x1xf32> to vector<8x16xf32>
    %57 = vector.broadcast %55 : vector<1x16xf32> to vector<8x16xf32>
    %58 = arith.addf %56, %57 : vector<8x16xf32>
    %59 = math.tanh %58 : vector<8x16xf32>
    %60 = arith.addf %53, %59 : vector<8x16xf32>
    %61 = vector.extract_strided_slice %3 {offsets = [0, 8], sizes = [8, 1], strides = [1, 1]} : vector<8x32xf32> to vector<8x1xf32>
    %c8 = arith.constant 8 : index
    %c0_13 = arith.constant 0 : index
    %62 = vector.load %arg4[%c8, %c0_13] : memref<32x16xf32, #tpu.memory_space<vmem>>, vector<1x16xf32>
    %63 = vector.broadcast %61 : vector<8x1xf32> to vector<8x16xf32>
    %64 = vector.broadcast %62 : vector<1x16xf32> to vector<8x16xf32>
    %65 = arith.addf %63, %64 : vector<8x16xf32>
    %66 = math.tanh %65 : vector<8x16xf32>
    %67 = arith.addf %60, %66 : vector<8x16xf32>
    %68 = vector.extract_strided_slice %3 {offsets = [0, 9], sizes = [8, 1], strides = [1, 1]} : vector<8x32xf32> to vector<8x1xf32>
    %c9 = arith.constant 9 : index
    %c0_14 = arith.constant 0 : index
    %69 = vector.load %arg4[%c9, %c0_14] : memref<32x16xf32, #tpu.memory_space<vmem>>, vector<1x16xf32>
    %70 = vector.broadcast %68 : vector<8x1xf32> to vector<8x16xf32>
    %71 = vector.broadcast %69 : vector<1x16xf32> to vector<8x16xf32>
    %72 = arith.addf %70, %71 : vector<8x16xf32>
    %73 = math.tanh %72 : vector<8x16xf32>
    %74 = arith.addf %67, %73 : vector<8x16xf32>
    %75 = vector.extract_strided_slice %3 {offsets = [0, 10], sizes = [8, 1], strides = [1, 1]} : vector<8x32xf32> to vector<8x1xf32>
    %c10 = arith.constant 10 : index
    %c0_15 = arith.constant 0 : index
    %76 = vector.load %arg4[%c10, %c0_15] : memref<32x16xf32, #tpu.memory_space<vmem>>, vector<1x16xf32>
    %77 = vector.broadcast %75 : vector<8x1xf32> to vector<8x16xf32>
    %78 = vector.broadcast %76 : vector<1x16xf32> to vector<8x16xf32>
    %79 = arith.addf %77, %78 : vector<8x16xf32>
    %80 = math.tanh %79 : vector<8x16xf32>
    %81 = arith.addf %74, %80 : vector<8x16xf32>
    %82 = vector.extract_strided_slice %3 {offsets = [0, 11], sizes = [8, 1], strides = [1, 1]} : vector<8x32xf32> to vector<8x1xf32>
    %c11 = arith.constant 11 : index
    %c0_16 = arith.constant 0 : index
    %83 = vector.load %arg4[%c11, %c0_16] : memref<32x16xf32, #tpu.memory_space<vmem>>, vector<1x16xf32>
    %84 = vector.broadcast %82 : vector<8x1xf32> to vector<8x16xf32>
    %85 = vector.broadcast %83 : vector<1x16xf32> to vector<8x16xf32>
    %86 = arith.addf %84, %85 : vector<8x16xf32>
    %87 = math.tanh %86 : vector<8x16xf32>
    %88 = arith.addf %81, %87 : vector<8x16xf32>
    %89 = vector.extract_strided_slice %3 {offsets = [0, 12], sizes = [8, 1], strides = [1, 1]} : vector<8x32xf32> to vector<8x1xf32>
    %c12 = arith.constant 12 : index
    %c0_17 = arith.constant 0 : index
    %90 = vector.load %arg4[%c12, %c0_17] : memref<32x16xf32, #tpu.memory_space<vmem>>, vector<1x16xf32>
    %91 = vector.broadcast %89 : vector<8x1xf32> to vector<8x16xf32>
    %92 = vector.broadcast %90 : vector<1x16xf32> to vector<8x16xf32>
    %93 = arith.addf %91, %92 : vector<8x16xf32>
    %94 = math.tanh %93 : vector<8x16xf32>
    %95 = arith.addf %88, %94 : vector<8x16xf32>
    %96 = vector.extract_strided_slice %3 {offsets = [0, 13], sizes = [8, 1], strides = [1, 1]} : vector<8x32xf32> to vector<8x1xf32>
    %c13 = arith.constant 13 : index
    %c0_18 = arith.constant 0 : index
    %97 = vector.load %arg4[%c13, %c0_18] : memref<32x16xf32, #tpu.memory_space<vmem>>, vector<1x16xf32>
    %98 = vector.broadcast %96 : vector<8x1xf32> to vector<8x16xf32>
    %99 = vector.broadcast %97 : vector<1x16xf32> to vector<8x16xf32>
    %100 = arith.addf %98, %99 : vector<8x16xf32>
    %101 = math.tanh %100 : vector<8x16xf32>
    %102 = arith.addf %95, %101 : vector<8x16xf32>
    %103 = vector.extract_strided_slice %3 {offsets = [0, 14], sizes = [8, 1], strides = [1, 1]} : vector<8x32xf32> to vector<8x1xf32>
    %c14 = arith.constant 14 : index
    %c0_19 = arith.constant 0 : index
    %104 = vector.load %arg4[%c14, %c0_19] : memref<32x16xf32, #tpu.memory_space<vmem>>, vector<1x16xf32>
    %105 = vector.broadcast %103 : vector<8x1xf32> to vector<8x16xf32>
    %106 = vector.broadcast %104 : vector<1x16xf32> to vector<8x16xf32>
    %107 = arith.addf %105, %106 : vector<8x16xf32>
    %108 = math.tanh %107 : vector<8x16xf32>
    %109 = arith.addf %102, %108 : vector<8x16xf32>
    %110 = vector.extract_strided_slice %3 {offsets = [0, 15], sizes = [8, 1], strides = [1, 1]} : vector<8x32xf32> to vector<8x1xf32>
    %c15 = arith.constant 15 : index
    %c0_20 = arith.constant 0 : index
    %111 = vector.load %arg4[%c15, %c0_20] : memref<32x16xf32, #tpu.memory_space<vmem>>, vector<1x16xf32>
    %112 = vector.broadcast %110 : vector<8x1xf32> to vector<8x16xf32>
    %113 = vector.broadcast %111 : vector<1x16xf32> to vector<8x16xf32>
    %114 = arith.addf %112, %113 : vector<8x16xf32>
    %115 = math.tanh %114 : vector<8x16xf32>
    %116 = arith.addf %109, %115 : vector<8x16xf32>
    %117 = vector.extract_strided_slice %3 {offsets = [0, 16], sizes = [8, 1], strides = [1, 1]} : vector<8x32xf32> to vector<8x1xf32>
    %c16 = arith.constant 16 : index
    %c0_21 = arith.constant 0 : index
    %118 = vector.load %arg4[%c16, %c0_21] : memref<32x16xf32, #tpu.memory_space<vmem>>, vector<1x16xf32>
    %119 = vector.broadcast %117 : vector<8x1xf32> to vector<8x16xf32>
    %120 = vector.broadcast %118 : vector<1x16xf32> to vector<8x16xf32>
    %121 = arith.addf %119, %120 : vector<8x16xf32>
    %122 = math.tanh %121 : vector<8x16xf32>
    %123 = arith.addf %116, %122 : vector<8x16xf32>
    %124 = vector.extract_strided_slice %3 {offsets = [0, 17], sizes = [8, 1], strides = [1, 1]} : vector<8x32xf32> to vector<8x1xf32>
    %c17 = arith.constant 17 : index
    %c0_22 = arith.constant 0 : index
    %125 = vector.load %arg4[%c17, %c0_22] : memref<32x16xf32, #tpu.memory_space<vmem>>, vector<1x16xf32>
    %126 = vector.broadcast %124 : vector<8x1xf32> to vector<8x16xf32>
    %127 = vector.broadcast %125 : vector<1x16xf32> to vector<8x16xf32>
    %128 = arith.addf %126, %127 : vector<8x16xf32>
    %129 = math.tanh %128 : vector<8x16xf32>
    %130 = arith.addf %123, %129 : vector<8x16xf32>
    %131 = vector.extract_strided_slice %3 {offsets = [0, 18], sizes = [8, 1], strides = [1, 1]} : vector<8x32xf32> to vector<8x1xf32>
    %c18 = arith.constant 18 : index
    %c0_23 = arith.constant 0 : index
    %132 = vector.load %arg4[%c18, %c0_23] : memref<32x16xf32, #tpu.memory_space<vmem>>, vector<1x16xf32>
    %133 = vector.broadcast %131 : vector<8x1xf32> to vector<8x16xf32>
    %134 = vector.broadcast %132 : vector<1x16xf32> to vector<8x16xf32>
    %135 = arith.addf %133, %134 : vector<8x16xf32>
    %136 = math.tanh %135 : vector<8x16xf32>
    %137 = arith.addf %130, %136 : vector<8x16xf32>
    %138 = vector.extract_strided_slice %3 {offsets = [0, 19], sizes = [8, 1], strides = [1, 1]} : vector<8x32xf32> to vector<8x1xf32>
    %c19 = arith.constant 19 : index
    %c0_24 = arith.constant 0 : index
    %139 = vector.load %arg4[%c19, %c0_24] : memref<32x16xf32, #tpu.memory_space<vmem>>, vector<1x16xf32>
    %140 = vector.broadcast %138 : vector<8x1xf32> to vector<8x16xf32>
    %141 = vector.broadcast %139 : vector<1x16xf32> to vector<8x16xf32>
    %142 = arith.addf %140, %141 : vector<8x16xf32>
    %143 = math.tanh %142 : vector<8x16xf32>
    %144 = arith.addf %137, %143 : vector<8x16xf32>
    %145 = vector.extract_strided_slice %3 {offsets = [0, 20], sizes = [8, 1], strides = [1, 1]} : vector<8x32xf32> to vector<8x1xf32>
    %c20 = arith.constant 20 : index
    %c0_25 = arith.constant 0 : index
    %146 = vector.load %arg4[%c20, %c0_25] : memref<32x16xf32, #tpu.memory_space<vmem>>, vector<1x16xf32>
    %147 = vector.broadcast %145 : vector<8x1xf32> to vector<8x16xf32>
    %148 = vector.broadcast %146 : vector<1x16xf32> to vector<8x16xf32>
    %149 = arith.addf %147, %148 : vector<8x16xf32>
    %150 = math.tanh %149 : vector<8x16xf32>
    %151 = arith.addf %144, %150 : vector<8x16xf32>
    %152 = vector.extract_strided_slice %3 {offsets = [0, 21], sizes = [8, 1], strides = [1, 1]} : vector<8x32xf32> to vector<8x1xf32>
    %c21 = arith.constant 21 : index
    %c0_26 = arith.constant 0 : index
    %153 = vector.load %arg4[%c21, %c0_26] : memref<32x16xf32, #tpu.memory_space<vmem>>, vector<1x16xf32>
    %154 = vector.broadcast %152 : vector<8x1xf32> to vector<8x16xf32>
    %155 = vector.broadcast %153 : vector<1x16xf32> to vector<8x16xf32>
    %156 = arith.addf %154, %155 : vector<8x16xf32>
    %157 = math.tanh %156 : vector<8x16xf32>
    %158 = arith.addf %151, %157 : vector<8x16xf32>
    %159 = vector.extract_strided_slice %3 {offsets = [0, 22], sizes = [8, 1], strides = [1, 1]} : vector<8x32xf32> to vector<8x1xf32>
    %c22 = arith.constant 22 : index
    %c0_27 = arith.constant 0 : index
    %160 = vector.load %arg4[%c22, %c0_27] : memref<32x16xf32, #tpu.memory_space<vmem>>, vector<1x16xf32>
    %161 = vector.broadcast %159 : vector<8x1xf32> to vector<8x16xf32>
    %162 = vector.broadcast %160 : vector<1x16xf32> to vector<8x16xf32>
    %163 = arith.addf %161, %162 : vector<8x16xf32>
    %164 = math.tanh %163 : vector<8x16xf32>
    %165 = arith.addf %158, %164 : vector<8x16xf32>
    %166 = vector.extract_strided_slice %3 {offsets = [0, 23], sizes = [8, 1], strides = [1, 1]} : vector<8x32xf32> to vector<8x1xf32>
    %c23 = arith.constant 23 : index
    %c0_28 = arith.constant 0 : index
    %167 = vector.load %arg4[%c23, %c0_28] : memref<32x16xf32, #tpu.memory_space<vmem>>, vector<1x16xf32>
    %168 = vector.broadcast %166 : vector<8x1xf32> to vector<8x16xf32>
    %169 = vector.broadcast %167 : vector<1x16xf32> to vector<8x16xf32>
    %170 = arith.addf %168, %169 : vector<8x16xf32>
    %171 = math.tanh %170 : vector<8x16xf32>
    %172 = arith.addf %165, %171 : vector<8x16xf32>
    %173 = vector.extract_strided_slice %3 {offsets = [0, 24], sizes = [8, 1], strides = [1, 1]} : vector<8x32xf32> to vector<8x1xf32>
    %c24 = arith.constant 24 : index
    %c0_29 = arith.constant 0 : index
    %174 = vector.load %arg4[%c24, %c0_29] : memref<32x16xf32, #tpu.memory_space<vmem>>, vector<1x16xf32>
    %175 = vector.broadcast %173 : vector<8x1xf32> to vector<8x16xf32>
    %176 = vector.broadcast %174 : vector<1x16xf32> to vector<8x16xf32>
    %177 = arith.addf %175, %176 : vector<8x16xf32>
    %178 = math.tanh %177 : vector<8x16xf32>
    %179 = arith.addf %172, %178 : vector<8x16xf32>
    %180 = vector.extract_strided_slice %3 {offsets = [0, 25], sizes = [8, 1], strides = [1, 1]} : vector<8x32xf32> to vector<8x1xf32>
    %c25 = arith.constant 25 : index
    %c0_30 = arith.constant 0 : index
    %181 = vector.load %arg4[%c25, %c0_30] : memref<32x16xf32, #tpu.memory_space<vmem>>, vector<1x16xf32>
    %182 = vector.broadcast %180 : vector<8x1xf32> to vector<8x16xf32>
    %183 = vector.broadcast %181 : vector<1x16xf32> to vector<8x16xf32>
    %184 = arith.addf %182, %183 : vector<8x16xf32>
    %185 = math.tanh %184 : vector<8x16xf32>
    %186 = arith.addf %179, %185 : vector<8x16xf32>
    %187 = vector.extract_strided_slice %3 {offsets = [0, 26], sizes = [8, 1], strides = [1, 1]} : vector<8x32xf32> to vector<8x1xf32>
    %c26 = arith.constant 26 : index
    %c0_31 = arith.constant 0 : index
    %188 = vector.load %arg4[%c26, %c0_31] : memref<32x16xf32, #tpu.memory_space<vmem>>, vector<1x16xf32>
    %189 = vector.broadcast %187 : vector<8x1xf32> to vector<8x16xf32>
    %190 = vector.broadcast %188 : vector<1x16xf32> to vector<8x16xf32>
    %191 = arith.addf %189, %190 : vector<8x16xf32>
    %192 = math.tanh %191 : vector<8x16xf32>
    %193 = arith.addf %186, %192 : vector<8x16xf32>
    %194 = vector.extract_strided_slice %3 {offsets = [0, 27], sizes = [8, 1], strides = [1, 1]} : vector<8x32xf32> to vector<8x1xf32>
    %c27 = arith.constant 27 : index
    %c0_32 = arith.constant 0 : index
    %195 = vector.load %arg4[%c27, %c0_32] : memref<32x16xf32, #tpu.memory_space<vmem>>, vector<1x16xf32>
    %196 = vector.broadcast %194 : vector<8x1xf32> to vector<8x16xf32>
    %197 = vector.broadcast %195 : vector<1x16xf32> to vector<8x16xf32>
    %198 = arith.addf %196, %197 : vector<8x16xf32>
    %199 = math.tanh %198 : vector<8x16xf32>
    %200 = arith.addf %193, %199 : vector<8x16xf32>
    %201 = vector.extract_strided_slice %3 {offsets = [0, 28], sizes = [8, 1], strides = [1, 1]} : vector<8x32xf32> to vector<8x1xf32>
    %c28 = arith.constant 28 : index
    %c0_33 = arith.constant 0 : index
    %202 = vector.load %arg4[%c28, %c0_33] : memref<32x16xf32, #tpu.memory_space<vmem>>, vector<1x16xf32>
    %203 = vector.broadcast %201 : vector<8x1xf32> to vector<8x16xf32>
    %204 = vector.broadcast %202 : vector<1x16xf32> to vector<8x16xf32>
    %205 = arith.addf %203, %204 : vector<8x16xf32>
    %206 = math.tanh %205 : vector<8x16xf32>
    %207 = arith.addf %200, %206 : vector<8x16xf32>
    %208 = vector.extract_strided_slice %3 {offsets = [0, 29], sizes = [8, 1], strides = [1, 1]} : vector<8x32xf32> to vector<8x1xf32>
    %c29 = arith.constant 29 : index
    %c0_34 = arith.constant 0 : index
    %209 = vector.load %arg4[%c29, %c0_34] : memref<32x16xf32, #tpu.memory_space<vmem>>, vector<1x16xf32>
    %210 = vector.broadcast %208 : vector<8x1xf32> to vector<8x16xf32>
    %211 = vector.broadcast %209 : vector<1x16xf32> to vector<8x16xf32>
    %212 = arith.addf %210, %211 : vector<8x16xf32>
    %213 = math.tanh %212 : vector<8x16xf32>
    %214 = arith.addf %207, %213 : vector<8x16xf32>
    %215 = vector.extract_strided_slice %3 {offsets = [0, 30], sizes = [8, 1], strides = [1, 1]} : vector<8x32xf32> to vector<8x1xf32>
    %c30 = arith.constant 30 : index
    %c0_35 = arith.constant 0 : index
    %216 = vector.load %arg4[%c30, %c0_35] : memref<32x16xf32, #tpu.memory_space<vmem>>, vector<1x16xf32>
    %217 = vector.broadcast %215 : vector<8x1xf32> to vector<8x16xf32>
    %218 = vector.broadcast %216 : vector<1x16xf32> to vector<8x16xf32>
    %219 = arith.addf %217, %218 : vector<8x16xf32>
    %220 = math.tanh %219 : vector<8x16xf32>
    %221 = arith.addf %214, %220 : vector<8x16xf32>
    %222 = vector.extract_strided_slice %3 {offsets = [0, 31], sizes = [8, 1], strides = [1, 1]} : vector<8x32xf32> to vector<8x1xf32>
    %c31 = arith.constant 31 : index
    %c0_36 = arith.constant 0 : index
    %223 = vector.load %arg4[%c31, %c0_36] : memref<32x16xf32, #tpu.memory_space<vmem>>, vector<1x16xf32>
    %224 = vector.broadcast %222 : vector<8x1xf32> to vector<8x16xf32>
    %225 = vector.broadcast %223 : vector<1x16xf32> to vector<8x16xf32>
    %226 = arith.addf %224, %225 : vector<8x16xf32>
    %227 = math.tanh %226 : vector<8x16xf32>
    %228 = arith.addf %221, %227 : vector<8x16xf32>
    %c0_37 = arith.constant 0 : index
    %c0_38 = arith.constant 0 : index
    %229 = vector.load %arg6[%c0_37, %c0_38] : memref<8x16xf32, #tpu.memory_space<vmem>>, vector<8x16xf32>
    tpu.vector_store %arg6[%c0_37, %c0_38], %228 {strides = array<i32>} : memref<8x16xf32, #tpu.memory_space<vmem>>, vector<8x16xf32>,
    %c0_i32_39 = arith.constant 0 : i32
    %230 = arith.cmpi eq, %arg2, %c0_i32_39 : i32
    %231 = arith.extui %230 : i1 to i32
    %c0_i32_40 = arith.constant 0 : i32
    %232 = arith.cmpi ne, %231, %c0_i32_40 : i32
    scf.if %232 {
      %c0_41 = arith.constant 0 : index
      %c0_42 = arith.constant 0 : index
      %233 = vector.load %arg6[%c0_41, %c0_42] : memref<8x16xf32, #tpu.memory_space<vmem>>, vector<8x16xf32>
      %c0_43 = arith.constant 0 : index
      %c0_44 = arith.constant 0 : index
      %234 = vector.load %arg5[%c0_43, %c0_44] : memref<8x16xf32, #tpu.memory_space<vmem>>, vector<8x16xf32>
      tpu.vector_store %arg5[%c0_43, %c0_44], %233 {strides = array<i32>} : memref<8x16xf32, #tpu.memory_space<vmem>>, vector<8x16xf32>,
    } else {
    }
    return
  }
  func.func @transform_0(%arg0: i32, %arg1: i32, %arg2: i32) -> (i32, i32) {
    %c0_i32 = arith.constant 0 : i32
    return %arg0, %arg2 : i32, i32
  }
  func.func @transform_1(%arg0: i32, %arg1: i32, %arg2: i32) -> (i32, i32) {
    %c0_i32 = arith.constant 0 : i32
    return %arg2, %arg1 : i32, i32
  }
  func.func @transform_2(%arg0: i32, %arg1: i32, %arg2: i32) -> (i32, i32) {
    %c0_i32 = arith.constant 0 : i32
    return %arg0, %arg1 : i32, i32
  }
}

</mosaic_0001>

<bundles_post_ra>
// kernel: tpu_custom_call.1
= control target key start
LH: loop header
LB: loop body
LE: loop exit
PB: predicated region body
PF: predicated region fallthrough
CT: control target
= control target key end

     0   :  { %v613_v1 = vmov 2   ;;  %v614_v2 = vmov 0   ;;  %s810_s0 = inlined_call_operand.vmem [shape: f32[8,32], index: 0, kind: input, shape index: {}]   ;;  %s811_s1 = inlined_call_operand.vmem [shape: f32[32,16], index: 1, kind: input, shape index: {}]   ;;  %s812_s2 = inlined_call_operand.hbm [shape: f32[8,16], index: 2, kind: output, shape index: {}]  }
   0x1   :  { %v665_v0 = vld [vmem:[%s810_s0] sm:$0xff]  ;;  %494 = vset.pattern.permute.xlu1 %v613_v1  ;;  %492 = vset.pattern.permute.xlu0 %v614_v2 }
   0x2   :  { %47 = vperm.xlu1 %494, %v665_v0   ;;  %23 = vperm.xlu0 %492, %v665_v0  }
   0x3   :  { %7 = vsyncpa [#allocation4], 0  ;;  %v615_v3 = vmov 3   ;;  %v616_v4 = vmov 1   ;;  %vm16_vm0 = vcmask 130048   ;;  %v617_v5 = vmov 4  }
   0x4   :  { %v618_v6 = vmov 5   ;;  %v619_v7 = vmov 0.0   ;;  %v620_v8 = vmov 6   ;;  %v621_v9 = vmov 8   ;;  %v426_v34 = vld [vmem:[%s811_s1] ss:$0 sm:$0xff] }
   0x5   :  { %17 = vst.msk [vmem:[#allocation2] sm:$0xff] %vm16_vm0, %v619_v7  ;;  %v622_v10 = vmov 7   ;;  %v623_v11 = vmov 11   ;;  %v624_v12 = vmov 9   ;;  %v625_v13 = vmov 14   ;;  %s646_s16 = smov [#allocation3]  }
   0x6   :  { %495 = vset.pattern.permute.xlu1 %v615_v3  ;;  %493 = vset.pattern.permute.xlu0 %v616_v4  ;;  %v626_v14 = vmov 10   ;;  %v627_v15 = vmov 17   ;;  %v628_v16 = vmov 12   ;;  %v629_v17 = vmov 20   ;;  %v427_v38 = vld [vmem:[%s811_s1 + $0x1] ss:$0 sm:$0xff] }
   0x7   :  { %59 = vperm.xlu1 %495, %v665_v0   ;;  %35 = vperm.xlu0 %493, %v665_v0   ;;  %v630_v18 = vmov 13   ;;  %v631_v19 = vmov 23   ;;  %v632_v20 = vmov 15   ;;  %v633_v21 = vmov 26   ;;  %v428_v39 = vld [vmem:[%s811_s1 + $0x2] ss:$0 sm:$0xff] }
   0x8   :  { %v634_v22 = vmov 16   ;;  %v635_v23 = vmov 29   ;;  %v636_v24 = vmov 18   ;;  %v637_v25 = vmov 31   ;;  %v429_v40 = vld [vmem:[%s811_s1 + $0x3] ss:$0 sm:$0xff] }
   0x9   :  { %v638_v26 = vmov 19   ;;  %v639_v27 = vmov 21   ;;  %v640_v28 = vmov 22   ;;  %v641_v29 = vmov 24   ;;  %v430_v46 = vld [vmem:[%s811_s1 + $0x4] ss:$0 sm:$0xff] }
   0xa   :  { %v642_v30 = vmov 25   ;;  %v643_v31 = vmov 27   ;;  %v644_v32 = vmov 28   ;;  %v645_v33 = vmov 30   ;;  %v431_v47 = vld [vmem:[%s811_s1 + $0x5] ss:$0 sm:$0xff] }
   0xb   :  { %496 = vset.pattern.permute.xlu1 %v617_v5  ;;  %497 = vset.pattern.permute.xlu0 %v618_v6  ;;  %v432_v52 = vld [vmem:[%s811_s1 + $0x6] ss:$0 sm:$0xff]  ;;  %v433_v58 = vld [vmem:[%s811_s1 + $0x7] ss:$0 sm:$0xff]  ;;  %v434_v59 = vld [vmem:[%s811_s1 + $0x8] ss:$0 sm:$0xff] }
   0xc   :  { %71 = vperm.xlu1 %496, %v665_v0   ;;  %83 = vperm.xlu0 %497, %v665_v0   ;;  %v19_v53 = vld [vmem:[#allocation2] sm:$0xff]  ;;  %v435_v6 = vld [vmem:[%s811_s1 + $0x9] ss:$0 sm:$0xff]  ;;  %s418_s17 = sshll.u32 %s646_s16, 4  ;;  %s419_s17 = int_to_ptr.vmem [resolvable:$true] %s418_s17 }
   0xd   :  { %p594_p1 = scmp.lt.s32.totalorder %s419_s17, %s419_s17 }
  0x10   :  { %498 = vset.pattern.permute.xlu1 %v620_v8  ;;  %500 = vset.pattern.permute.xlu0 %v621_v9 }
  0x11   :  { %95 = vperm.xlu1 %498, %v665_v0   ;;  %119 = vperm.xlu0 %500, %v665_v0  }
  0x15   :  { %499 = vset.pattern.permute.xlu1 %v622_v10  ;;  %503 = vset.pattern.permute.xlu0 %v623_v11 }
  0x16   :  { %107 = vperm.xlu1 %499, %v665_v0   ;;  %155 = vperm.xlu0 %503, %v665_v0  }
  0x1a   :  { %501 = vset.pattern.permute.xlu1 %v624_v12  ;;  %506 = vset.pattern.permute.xlu0 %v625_v13  ;;  %v436_v12 = vld [vmem:[%s811_s1 + $0xa] ss:$0 sm:$0xff]  ;;  %v437_v13 = vld [vmem:[%s811_s1 + $0xb] ss:$0 sm:$0xff] }
  0x1b   :  { %131 = vperm.xlu1 %501, %v665_v0   ;;  %191 = vperm.xlu0 %506, %v665_v0  }
  0x1f   :  { %502 = vset.pattern.permute.xlu1 %v626_v14  ;;  %509 = vset.pattern.permute.xlu0 %v627_v15 }
  0x20   :  { %143 = vperm.xlu1 %502, %v665_v0   ;;  %227 = vperm.xlu0 %509, %v665_v0  }
  0x24   :  { %504 = vset.pattern.permute.xlu1 %v628_v16  ;;  %512 = vset.pattern.permute.xlu0 %v629_v17 }
  0x25   :  { %167 = vperm.xlu1 %504, %v665_v0   ;;  %263 = vperm.xlu0 %512, %v665_v0  }
  0x29   :  { %505 = vset.pattern.permute.xlu1 %v630_v18  ;;  %515 = vset.pattern.permute.xlu0 %v631_v19 }
  0x2a   :  { %179 = vperm.xlu1 %505, %v665_v0   ;;  %299 = vperm.xlu0 %515, %v665_v0  }
  0x2e   :  { %507 = vset.pattern.permute.xlu1 %v632_v20  ;;  %518 = vset.pattern.permute.xlu0 %v633_v21 }
  0x2f   :  { %203 = vperm.xlu1 %507, %v665_v0   ;;  %335 = vperm.xlu0 %518, %v665_v0  }
  0x33   :  { %508 = vset.pattern.permute.xlu1 %v634_v22  ;;  %521 = vset.pattern.permute.xlu0 %v635_v23  ;;  %v438_v22 = vld [vmem:[%s811_s1 + $0xc] ss:$0 sm:$0xff] }
  0x34   :  { %215 = vperm.xlu1 %508, %v665_v0   ;;  %371 = vperm.xlu0 %521, %v665_v0  }
  0x38   :  { %510 = vset.pattern.permute.xlu1 %v636_v24  ;;  %524 = vset.pattern.permute.xlu0 %v637_v25 }
  0x39   :  { %239 = vperm.xlu1 %510, %v665_v0  }
  0x3d   :  { %511 = vset.pattern.permute.xlu1 %v638_v26 }
  0x3e   :  { %251 = vperm.xlu1 %511, %v665_v0  }
  0x42   :  { %513 = vset.pattern.permute.xlu1 %v639_v27  ;;  %v439_v27 = vld [vmem:[%s811_s1 + $0xd] ss:$0 sm:$0xff] }
  0x43   :  { %275 = vperm.xlu1 %513, %v665_v0  }
  0x47   :  { %514 = vset.pattern.permute.xlu1 %v640_v28  ;;  %v440_v28 = vld [vmem:[%s811_s1 + $0xe] ss:$0 sm:$0xff] }
  0x48   :  { %287 = vperm.xlu1 %514, %v665_v0  }
  0x4c   :  { %516 = vset.pattern.permute.xlu1 %v641_v29 }
  0x4d   :  { %311 = vperm.xlu1 %516, %v665_v0  }
  0x51   :  { %517 = vset.pattern.permute.xlu1 %v642_v30 }
  0x52   :  { %323 = vperm.xlu1 %517, %v665_v0  }
  0x56   :  { %519 = vset.pattern.permute.xlu1 %v643_v31 }
  0x57   :  { %347 = vperm.xlu1 %519, %v665_v0  }
  0x5b   :  { %520 = vset.pattern.permute.xlu1 %v644_v32 }
  0x5c   :  { %359 = vperm.xlu1 %520, %v665_v0  }
  0x60   :  { %522 = vset.pattern.permute.xlu1 %v645_v33 }
  0x61   :  { %383 = vperm.xlu1 %522, %v665_v0  }
  0x65   :  { %523 = vset.pattern.permute.xlu1 %v637_v25 }
  0x66   :  { %395 = vperm.xlu1 %523, %v665_v0  }
  0x81   :  { %v48_v35 = vpop.permute.xlu1 %47  ;;  %v24_v36 = vpop.permute.xlu0 %23 }
  0x82   :  { %v30_v37 = vadd.f32 %v426_v34, %v24_v36  ;;  %v54_v44 = vadd.f32 %v428_v39, %v48_v35 }
  0x84   :  { %525 = vtanh.f32 %v30_v37  ;;  %v441_v37 = vld [vmem:[%s811_s1 + $0xf] ss:$0 sm:$0xff] }
  0x86   :  { %v60_v41 = vpop.permute.xlu1 %59  ;;  %v36_v42 = vpop.permute.xlu0 %35 }
  0x87   :  { %v42_v43 = vadd.f32 %v427_v38, %v36_v42  ;;  %v66_v45 = vadd.f32 %v429_v40, %v60_v41  ;;  %v442_v42 = vld [vmem:[%s811_s1 + $0x10] ss:$0 sm:$0xff] }
  0x89   :  { %527 = vtanh.f32 %v42_v43  ;;  %v443_v43 = vld [vmem:[%s811_s1 + $0x11] ss:$0 sm:$0xff] }
  0x8a   :  { %529 = vtanh.f32 %v54_v44 }
  0x8b   :  { %v72_v48 = vpop.permute.xlu1 %71  ;;  %v84_v49 = vpop.permute.xlu0 %83  ;;  %531 = vtanh.f32 %v66_v45 }
  0x8c   :  { %v78_v50 = vadd.f32 %v430_v46, %v72_v48  ;;  %v90_v51 = vadd.f32 %v431_v47, %v84_v49 }
  0x8e   :  { %533 = vtanh.f32 %v78_v50  ;;  %v526_v54 = vpop.eup %525 }
  0x8f   :  { %535 = vtanh.f32 %v90_v51  ;;  %v32_v57 = vadd.f32 %v526_v54, %v19_v53 }
  0x90   :  { %v96_v55 = vpop.permute.xlu1 %95  ;;  %v120_v60 = vpop.permute.xlu0 %119 }
  0x91   :  { %v102_v56 = vadd.f32 %v432_v52, %v96_v55  ;;  %v126_v2 = vadd.f32 %v434_v59, %v120_v60  ;;  %v444_v52 = vld [vmem:[%s811_s1 + $0x12] ss:$0 sm:$0xff] }
  0x93   :  { %v528_v61 = vpop.eup %527  ;;  %537 = vtanh.f32 %v102_v56 }
  0x94   :  { %v44_v63 = vadd.f32 %v528_v61, %v32_v57  ;;  %v530_v0 = vpop.eup %529  ;;  %v445_v57 = vld [vmem:[%s811_s1 + $0x13] ss:$0 sm:$0xff] }
  0x95   :  { %v108_v62 = vpop.permute.xlu1 %107  ;;  %v532_v3 = vpop.eup %531 }
  0x96   :  { %v114_v1 = vadd.f32 %v433_v58, %v108_v62  ;;  %v56_v4 = vadd.f32 %v530_v0, %v44_v63  ;;  %v156_v14 = vpop.permute.xlu0 %155  ;;  %v446_v58 = vld [vmem:[%s811_s1 + $0x14] ss:$0 sm:$0xff] }
  0x97   :  { %v162_v19 = vadd.f32 %v437_v13, %v156_v14 }
  0x98   :  { %v534_v5 = vpop.eup %533  ;;  %539 = vtanh.f32 %v114_v1  ;;  %v68_v7 = vadd.f32 %v532_v3, %v56_v4  ;;  %v447_v3 = vld [vmem:[%s811_s1 + $0x15] ss:$0 sm:$0xff] }
  0x99   :  { %v536_v8 = vpop.eup %535  ;;  %541 = vtanh.f32 %v126_v2 }
  0x9a   :  { %v132_v9 = vpop.permute.xlu1 %131  ;;  %v80_v11 = vadd.f32 %v534_v5, %v68_v7  ;;  %v192_v29 = vpop.permute.xlu0 %191 }
  0x9b   :  { %v138_v10 = vadd.f32 %v435_v6, %v132_v9  ;;  %v198_v34 = vadd.f32 %v440_v28, %v192_v29  ;;  %v449_v9 = vld [vmem:[%s811_s1 + $0x17] ss:$0 sm:$0xff] }
  0x9c   :  { %v92_v15 = vadd.f32 %v536_v8, %v80_v11  ;;  %v448_v8 = vld [vmem:[%s811_s1 + $0x16] ss:$0 sm:$0xff] }
  0x9d   :  { %v538_v16 = vpop.eup %537  ;;  %543 = vtanh.f32 %v138_v10 }
  0x9e   :  { %v104_v20 = vadd.f32 %v538_v16, %v92_v15 }
  0x9f   :  { %v144_v17 = vpop.permute.xlu1 %143  ;;  %v228_v44 = vpop.permute.xlu0 %227 }
  0xa0   :  { %v150_v18 = vadd.f32 %v436_v12, %v144_v17  ;;  %v234_v49 = vadd.f32 %v443_v43, %v228_v44 }
  0xa2   :  { %v540_v21 = vpop.eup %539  ;;  %545 = vtanh.f32 %v150_v18  ;;  %v450_v18 = vld [vmem:[%s811_s1 + $0x18] ss:$0 sm:$0xff] }
  0xa3   :  { %v116_v23 = vadd.f32 %v540_v21, %v104_v20  ;;  %v542_v24 = vpop.eup %541  ;;  %547 = vtanh.f32 %v162_v19 }
  0xa4   :  { %v168_v25 = vpop.permute.xlu1 %167  ;;  %v264_v59 = vpop.permute.xlu0 %263 }
  0xa5   :  { %v174_v26 = vadd.f32 %v438_v22, %v168_v25  ;;  %v128_v30 = vadd.f32 %v542_v24, %v116_v23  ;;  %v270_v0 = vadd.f32 %v446_v58, %v264_v59  ;;  %v451_v23 = vld [vmem:[%s811_s1 + $0x19] ss:$0 sm:$0xff]  ;;  %v452_v24 = vld [vmem:[%s811_s1 + $0x1a] ss:$0 sm:$0xff] }
  0xa7   :  { %v544_v31 = vpop.eup %543  ;;  %549 = vtanh.f32 %v174_v26 }
  0xa8   :  { %v140_v35 = vadd.f32 %v544_v31, %v128_v30 }
  0xa9   :  { %v180_v32 = vpop.permute.xlu1 %179  ;;  %v300_v10 = vpop.permute.xlu0 %299 }
  0xaa   :  { %v186_v33 = vadd.f32 %v439_v27, %v180_v32  ;;  %v306_v15 = vadd.f32 %v449_v9, %v300_v10 }
  0xac   :  { %v546_v36 = vpop.eup %545  ;;  %551 = vtanh.f32 %v186_v33  ;;  %v453_v33 = vld [vmem:[%s811_s1 + $0x1b] ss:$0 sm:$0xff] }
  0xad   :  { %v152_v38 = vadd.f32 %v546_v36, %v140_v35  ;;  %v548_v39 = vpop.eup %547  ;;  %553 = vtanh.f32 %v198_v34 }
  0xae   :  { %v204_v40 = vpop.permute.xlu1 %203  ;;  %v336_v25 = vpop.permute.xlu0 %335 }
  0xaf   :  { %v210_v41 = vadd.f32 %v441_v37, %v204_v40  ;;  %v164_v45 = vadd.f32 %v548_v39, %v152_v38  ;;  %v342_v30 = vadd.f32 %v452_v24, %v336_v25  ;;  %v454_v38 = vld [vmem:[%s811_s1 + $0x1c] ss:$0 sm:$0xff]  ;;  %v455_v39 = vld [vmem:[%s811_s1 + $0x1d] ss:$0 sm:$0xff] }
  0xb1   :  { %v550_v46 = vpop.eup %549  ;;  %555 = vtanh.f32 %v210_v41 }
  0xb2   :  { %v176_v50 = vadd.f32 %v550_v46, %v164_v45 }
  0xb3   :  { %v216_v47 = vpop.permute.xlu1 %215  ;;  %v372_v40 = vpop.permute.xlu0 %371 }
  0xb4   :  { %v222_v48 = vadd.f32 %v442_v42, %v216_v47  ;;  %v378_v45 = vadd.f32 %v455_v39, %v372_v40 }
  0xb6   :  { %v552_v51 = vpop.eup %551  ;;  %557 = vtanh.f32 %v222_v48  ;;  %v456_v48 = vld [vmem:[%s811_s1 + $0x1e] ss:$0 sm:$0xff] }
  0xb7   :  { %v188_v53 = vadd.f32 %v552_v51, %v176_v50  ;;  %v554_v54 = vpop.eup %553  ;;  %559 = vtanh.f32 %v234_v49 }
  0xb8   :  { %v240_v55 = vpop.permute.xlu1 %239 }
  0xb9   :  { %v246_v56 = vadd.f32 %v444_v52, %v240_v55  ;;  %v200_v60 = vadd.f32 %v554_v54, %v188_v53  ;;  %v457_v53 = vld [vmem:[%s811_s1 + $0x1f] ss:$0 sm:$0xff]  ;;  %s589_s1 = scalar_lea.vmem %s419_s17, 128 }
  0xba   :  { %p590_p0 = scmp.ne.s32.totalorder %s419_s17, %s589_s1  ;;  %p595_p2 = scmp.lt.s32.totalorder %s589_s1, %s589_s1 }
  0xbb   :  { %v556_v61 = vpop.eup %555  ;;  %561 = vtanh.f32 %v246_v56 }
  0xbc   :  { %v212_v1 = vadd.f32 %v556_v61, %v200_v60  ;;  %p596_p3 = por %p595_p2, %p594_p1 }
  0xbd   :  { %v252_v62 = vpop.permute.xlu1 %251 }
  0xbe   :  { %v258_v63 = vadd.f32 %v445_v57, %v252_v62  ;;  %p597_p4 = pnand %p596_p3, %p590_p0 }
  0xc0   :  { %v558_v2 = vpop.eup %557  ;;  %563 = vtanh.f32 %v258_v63 }
  0xc1   :  { %v224_v4 = vadd.f32 %v558_v2, %v212_v1  ;;  %v560_v5 = vpop.eup %559  ;;  %565 = vtanh.f32 %v270_v0 }
  0xc2   :  { %v276_v6 = vpop.permute.xlu1 %275 }
  0xc3   :  { %v282_v7 = vadd.f32 %v447_v3, %v276_v6  ;;  %v236_v11 = vadd.f32 %v560_v5, %v224_v4 }
  0xc5   :  { %v562_v12 = vpop.eup %561  ;;  %567 = vtanh.f32 %v282_v7 }
  0xc6   :  { %v248_v16 = vadd.f32 %v562_v12, %v236_v11 }
  0xc7   :  { %v288_v13 = vpop.permute.xlu1 %287 }
  0xc8   :  { %v294_v14 = vadd.f32 %v448_v8, %v288_v13 }
  0xca   :  { %v564_v17 = vpop.eup %563  ;;  %569 = vtanh.f32 %v294_v14 }
  0xcb   :  { %v260_v19 = vadd.f32 %v564_v17, %v248_v16  ;;  %v566_v20 = vpop.eup %565  ;;  %571 = vtanh.f32 %v306_v15 }
  0xcc   :  { %v312_v21 = vpop.permute.xlu1 %311 }
  0xcd   :  { %v318_v22 = vadd.f32 %v450_v18, %v312_v21  ;;  %v272_v26 = vadd.f32 %v566_v20, %v260_v19 }
  0xcf   :  { %v568_v27 = vpop.eup %567  ;;  %573 = vtanh.f32 %v318_v22 }
  0xd0   :  { %v284_v31 = vadd.f32 %v568_v27, %v272_v26 }
  0xd1   :  { %v324_v28 = vpop.permute.xlu1 %323 }
  0xd2   :  { %v330_v29 = vadd.f32 %v451_v23, %v324_v28 }
  0xd4   :  { %v570_v32 = vpop.eup %569  ;;  %575 = vtanh.f32 %v330_v29 }
  0xd5   :  { %v296_v34 = vadd.f32 %v570_v32, %v284_v31  ;;  %v572_v35 = vpop.eup %571  ;;  %577 = vtanh.f32 %v342_v30 }
  0xd6   :  { %v348_v36 = vpop.permute.xlu1 %347 }
  0xd7   :  { %v354_v37 = vadd.f32 %v453_v33, %v348_v36  ;;  %v308_v41 = vadd.f32 %v572_v35, %v296_v34 }
  0xd9   :  { %v574_v42 = vpop.eup %573  ;;  %579 = vtanh.f32 %v354_v37 }
  0xda   :  { %v320_v46 = vadd.f32 %v574_v42, %v308_v41 }
  0xdb   :  { %v360_v43 = vpop.permute.xlu1 %359 }
  0xdc   :  { %v366_v44 = vadd.f32 %v454_v38, %v360_v43 }
  0xde   :  { %v576_v47 = vpop.eup %575  ;;  %581 = vtanh.f32 %v366_v44 }
  0xdf   :  { %v332_v49 = vadd.f32 %v576_v47, %v320_v46  ;;  %v578_v50 = vpop.eup %577  ;;  %583 = vtanh.f32 %v378_v45 }
  0xe0   :  { %v384_v51 = vpop.permute.xlu1 %383 }
  0xe1   :  { %v390_v52 = vadd.f32 %v456_v48, %v384_v51  ;;  %v344_v54 = vadd.f32 %v578_v50, %v332_v49 }
  0xe3   :  { %v580_v55 = vpop.eup %579  ;;  %585 = vtanh.f32 %v390_v52 }
  0xe4   :  { %v356_v58 = vadd.f32 %v580_v55, %v344_v54 }
  0xe5   :  { %v396_v56 = vpop.permute.xlu1 %395 }
  0xe6   :  { %v402_v57 = vadd.f32 %v457_v53, %v396_v56 }
  0xe8   :  { %v582_v59 = vpop.eup %581  ;;  %587 = vtanh.f32 %v402_v57 }
  0xe9   :  { %v368_v60 = vadd.f32 %v582_v59, %v356_v58  ;;  %v584_v61 = vpop.eup %583 }
  0xeb   :  { %v380_v62 = vadd.f32 %v584_v61, %v368_v60 }
  0xed   :  { %v586_v63 = vpop.eup %585 }
  0xee   :  { %v392_v0 = vadd.f32 %v586_v63, %v380_v62 }
  0xf2   :  { %v588_v1 = vpop.eup %587 }
  0xf3   :  { %v404_v2 = vadd.f32 %v588_v1, %v392_v0 }
  0xf5   :  { %406 = vst.msk [vmem:[#allocation2] sm:$0xff] %vm16_vm0, %v404_v2 }
  0xfc   :  { %v410_v3 = vld [vmem:[#allocation2] sm:$0xff] }
  0xfd   :  { %411 = vst.msk [vmem:[#allocation3] sm:$0xff] %vm16_vm0, %v410_v3 }
  0xfe   :  { %600 = shalt.err (!%p597_p4)
}
  0xff   :  { %s601_s20 = scalar_lea.hbm %s812_s2, 128 }
 0x100   :  { %p602_p5 = scmp.ne.s32.totalorder %s812_s2, %s601_s20  ;;  %p605_p6 = scmp.lt.u32.totalorder %s601_s20, %s812_s2 }
 0x102   :  { %p607_p7 = pnand %p605_p6, %p602_p5 }
 0x104   :  { %610 = shalt.err (!%p607_p7)
}
 0x105   :  { %421 = dma.vmem_to_hbm [thread:$0]  %s419_s17, 128, %s812_s2, [#allocation4]  }
 0x106   :  { %611 = dma.done.wait [#allocation4], 128  }
 0x107   :  { %612 = vsyncadd [#allocation4], 4294967168 }
 0x108   :  { %425 = vsyncpa [#allocation4], 1 }

</bundles_post_ra>
